<compile_context>
chip_gen: v7x
topology: tpu7x:2x2x1
jax: 0.10.0
libtpu: 0.0.40
codegen_flags: <defaults>
</compile_context>

<pallas_src>
import functools

import numpy as np
import jax
import jax.numpy as jnp
from jax.experimental import pallas as pl
from jax.experimental.pallas import tpu as pltpu

# ----- small, module-consistent configuration -----
SAMPLE_RATE = 2000
WINDOW_SIZE = 64          # n_fft == win_length
HOP_SIZE = 16
MEL_BINS = 16
FMIN = 50.0
FMAX = 1000.0
CLASSES_NUM = 10
AMIN = 1e-10
BN_EPS = 1e-5

N_FFT = WINDOW_SIZE
N_FREQ = N_FFT // 2 + 1
LANES = 128               # TPU lane width; everything is packed lane-dense
RE_OFF = 0                # real DFT lanes 0..N_FREQ-1
IM_OFF = 64               # imag DFT lanes 64..64+N_FREQ-1


def _round_up(x, m):
    return ((x + m - 1) // m) * m


# ---------------- deterministic constant buffers (STFT / mel) ----------------
def _hann_window(n):
    # periodic hann, matches torch.hann_window / scipy fftbins=True
    return 0.5 - 0.5 * np.cos(2.0 * np.pi * np.arange(n) / n)


def _dft_bases(n_fft):
    n = np.arange(n_fft)[:, None]
    k = np.arange(N_FREQ)[None, :]
    ang = 2.0 * np.pi * n * k / n_fft
    win = _hann_window(n_fft)[:, None]
    wr = (win * np.cos(ang)).astype(np.float32)    # (n_fft, F)
    wi = (-win * np.sin(ang)).astype(np.float32)   # (n_fft, F)
    return wr, wi


def _mel_filterbank(sr, n_fft, n_mels, fmin, fmax):
    # Triangular mel filterbank with Slaney area normalization, shape (F, n_mels).
    # TODO(synk): librosa (used by torchlibrosa's LogmelFilterBank) uses the Slaney
    # mel *scale*; this HTK-scale bank is a deterministic same-shape stand-in.
    def hz2mel(f): return 2595.0 * np.log10(1.0 + f / 700.0)
    def mel2hz(m): return 700.0 * (10.0 ** (m / 2595.0) - 1.0)
    mels = np.linspace(hz2mel(fmin), hz2mel(fmax), n_mels + 2)
    hz = mel2hz(mels)
    bin_f = hz * n_fft / sr
    fb = np.zeros((n_mels, N_FREQ), dtype=np.float64)
    freqs = np.arange(N_FREQ, dtype=np.float64)
    for m in range(n_mels):
        left, center, right = bin_f[m], bin_f[m + 1], bin_f[m + 2]
        up = (freqs - left) / max(center - left, 1e-6)
        down = (right - freqs) / max(right - center, 1e-6)
        fb[m] = np.maximum(0.0, np.minimum(up, down))
    enorm = 2.0 / (hz[2:n_mels + 2] - hz[:n_mels])     # Slaney area normalization
    fb *= enorm[:, None]
    return fb.T.astype(np.float32)                     # (N_FREQ, n_mels)


def _fused_dft_basis():
    """(128, 128): contraction rows 0..63 = windowed samples; cols 0..32 = re, 64..96 = im."""
    wr, wi = _dft_bases(N_FFT)
    b = np.zeros((LANES, LANES), dtype=np.float32)
    b[:N_FFT, RE_OFF:RE_OFF + N_FREQ] = wr
    b[:N_FFT, IM_OFF:IM_OFF + N_FREQ] = wi
    return b


def _mel_bank_3ch():
    """(128, 128): maps re^2 lanes AND im^2 lanes onto [melW | melW | melW] columns.

    Since mel_m = sum_k (re_k^2 + im_k^2) * M_km, placing melW under both the re^2
    lane block and the im^2 lane block lets one matmul compute power->mel->3-channel
    replication directly from the squared fused-DFT result.
    """
    melW = _mel_filterbank(SAMPLE_RATE, N_FFT, MEL_BINS, FMIN, FMAX)   # (F, M)
    m = np.zeros((LANES, LANES), dtype=np.float32)
    for c in range(3):
        m[RE_OFF:RE_OFF + N_FREQ, c * MEL_BINS:(c + 1) * MEL_BINS] = melW
        m[IM_OFF:IM_OFF + N_FREQ, c * MEL_BINS:(c + 1) * MEL_BINS] = melW
    return m


# ------------------------------- Pallas kernel --------------------------------
def _feature_head_kernel(T_valid, tile_t,
                         frames_ref, basis_ref, mel_ref, scale_ref, shift_ref,
                         weff_ref, beff_ref,
                         slab_ref, logits_ref, acc_ref):
    """Fused STFT-power -> logmel -> BN(3ch) feature slab + pooled linear head.

    frames_ref : (1, tile_t, 128) bf16   zero-padded frames (lanes 64.. = 0)
    basis_ref  : (128, 128)       bf16   fused [wr | wi] DFT basis
    mel_ref    : (128, 128)       bf16   re^2/im^2 -> 3x mel mapping
    scale_ref/shift_ref : (1, 128) f32   BN scale/shift broadcast per 16-lane channel
    weff_ref/beff_ref   : (1, C)   f32   head weights with BN folded in
    slab_ref   : (1, tile_t, 128) f32    lanes 0..47 = BN'd logmel (3 channels x 16)
    logits_ref : (1, 1, C)        f32
    acc_ref    : (1, 1)           f32    running sum of logmel over valid (t, mel)
    """
    t = pl.program_id(1)

    @pl.when(t == 0)
    def _():
        acc_ref[...] = jnp.zeros_like(acc_ref)

    f = frames_ref[0]                                                    # (tile_t, 128) bf16
    # One fused MXU pass: lanes 0..32 = re, 64..96 = im (rest zero).
    res = jnp.dot(f, basis_ref[...], preferred_element_type=jnp.float32)
    sq = res * res                                                       # re^2 / im^2 lanes
    # Second MXU pass: power spectrum -> mel, replicated over 3 channels (lanes 0..47).
    mel3 = jnp.dot(sq.astype(jnp.bfloat16), mel_ref[...],
                   preferred_element_type=jnp.float32)
    # power_to_db with ref=1.0, amin=1e-10, top_db=None (f32 elementwise).
    logmel = (10.0 / np.log(10.0)) * jnp.log(jnp.maximum(mel3, AMIN))
    # BatchNorm2d(3) in eval mode on cat([x, x, x], dim=1): one broadcast FMA,
    # single lane-dense 128-wide store.
    slab_ref[0] = logmel * scale_ref[...] + shift_ref[...]

    # ---- fused head: accumulate sum of logmel over valid (time, mel) positions ----
    rows = jax.lax.broadcasted_iota(jnp.int32, logmel.shape, 0) + t * tile_t
    lanes = jax.lax.broadcasted_iota(jnp.int32, logmel.shape, 1)
    valid = (rows < T_valid) & (lanes < MEL_BINS)
    acc_ref[...] += jnp.sum(jnp.where(valid, logmel, 0.0), keepdims=True)

    @pl.when(t == pl.num_programs(1) - 1)
    def _():
        # GAP over (T, mel) of the BN'd 3-channel features, then Linear, with the
        # (exact) algebraic fold: mean_c = scale_c * mean(logmel) + shift_c,
        # logits = mean(logmel) * (scale @ W) + (shift @ W + b) = mean * w_eff + b_eff.
        mean = acc_ref[...] * (1.0 / (T_valid * MEL_BINS))               # (1, 1)
        logits_ref[0] = mean * weff_ref[...] + beff_ref[...]             # (1, C)


# --------------------------------- wrapper ------------------------------------
def audio_classifier_forward(x, params):
    """x: (B, L) float32 waveform. Returns (features (B,3,T,MEL), logits (B,C))."""
    B, L = x.shape
    pad = N_FFT // 2
    xp = jnp.pad(x, ((0, 0), (pad, pad)), mode="reflect")     # center=True, reflect
    T = 1 + (xp.shape[1] - N_FFT) // HOP_SIZE

    # TODO(synk): frames are materialized with a 4x-overlap gather in the wrapper;
    # for long waveforms, frame in-kernel with pl.ds over the padded waveform instead.
    idx = np.arange(T)[:, None] * HOP_SIZE + np.arange(N_FFT)[None, :]
    frames = xp[:, idx]                                        # (B, T, N_FFT)

    # Row-tiling over time frames; tile_t multiple of 16 (bf16 sublane packing).
    tile_t = min(128, _round_up(T, 16))
    num_t = -(-T // tile_t)
    T_pad = num_t * tile_t
    # Zero-pad time rows and the 64-sample contraction axis up to 128 lanes,
    # cast MXU operands to bf16 (f32 accumulation in-kernel).
    frames = jnp.pad(frames, ((0, 0), (0, T_pad - T), (0, LANES - N_FFT)))
    frames = frames.astype(jnp.bfloat16)

    kernel = functools.partial(_feature_head_kernel, T, tile_t)

    cost = pl.CostEstimate(
        flops=4 * B * T_pad * LANES * LANES + 8 * B * T_pad * LANES,
        transcendentals=B * T_pad * LANES,
        bytes_accessed=(B * T_pad * LANES * 2            # frames (bf16)
                        + 2 * LANES * LANES * 2          # basis + mel (bf16)
                        + 2 * LANES * 4                  # bn scale/shift
                        + 2 * CLASSES_NUM * 4            # head w_eff/b_eff
                        + B * T_pad * LANES * 4          # feature slab out
                        + B * CLASSES_NUM * 4))          # logits out

    slab, logits3 = pl.pallas_call(
        kernel,
        out_shape=(jax.ShapeDtypeStruct((B, T_pad, LANES), jnp.float32),
                   jax.ShapeDtypeStruct((B, 1, CLASSES_NUM), jnp.float32)),
        grid=(B, num_t),
        in_specs=[
            pl.BlockSpec((1, tile_t, LANES), lambda b, t: (b, t, 0)),     # frames
            pl.BlockSpec((LANES, LANES), lambda b, t: (0, 0)),            # fused DFT basis
            pl.BlockSpec((LANES, LANES), lambda b, t: (0, 0)),            # mel (3ch) bank
            pl.BlockSpec((1, LANES), lambda b, t: (0, 0)),                # bn scale (128)
            pl.BlockSpec((1, LANES), lambda b, t: (0, 0)),                # bn shift (128)
            pl.BlockSpec((1, CLASSES_NUM), lambda b, t: (0, 0)),          # head w_eff
            pl.BlockSpec((1, CLASSES_NUM), lambda b, t: (0, 0)),          # head b_eff
        ],
        out_specs=(
            pl.BlockSpec((1, tile_t, LANES), lambda b, t: (b, t, 0)),     # feature slab
            pl.BlockSpec((1, 1, CLASSES_NUM), lambda b, t: (b, 0, 0)),    # logits (resident over t)
        ),
        scratch_shapes=[pltpu.VMEM((1, 1), jnp.float32)],                 # pooled-sum accumulator
        compiler_params=pltpu.CompilerParams(
            dimension_semantics=("parallel", "arbitrary")),
        cost_estimate=cost,
    )(frames, params["basis"], params["mel3"],
      params["bn_scale128"], params["bn_shift128"],
      params["w_eff"], params["b_eff"])

    # Free wrapper-side layout plumbing back to the module's NCHW feature layout.
    feats = slab[:, :T, :3 * MEL_BINS].reshape(B, T, 3, MEL_BINS).transpose(0, 2, 1, 3)
    logits = logits3[:, 0, :]
    return feats, logits


def make_params():
    key = jax.random.PRNGKey(0)
    k1, k2, k3, k4, k5, k6 = jax.random.split(key, 6)

    basis = _fused_dft_basis()          # (128, 128)
    mel3 = _mel_bank_3ch()              # (128, 128)

    # BatchNorm2d(3) eval-mode parameters (deterministic, non-trivial)
    gamma = jax.random.uniform(k1, (3,), jnp.float32, 0.5, 1.5)
    beta = 0.1 * jax.random.normal(k2, (3,), jnp.float32)
    rmean = 0.1 * jax.random.normal(k3, (3,), jnp.float32)
    rvar = jax.random.uniform(k4, (3,), jnp.float32, 0.5, 1.5)
    bn_scale = (gamma / jnp.sqrt(rvar + BN_EPS)).astype(jnp.float32)   # (3,)
    bn_shift = (beta - rmean * bn_scale).astype(jnp.float32)           # (3,)

    # BN scale/shift broadcast per 16-lane channel block (lanes 48..127 -> 0).
    scale128 = jnp.zeros((LANES,), jnp.float32).at[:3 * MEL_BINS].set(
        jnp.repeat(bn_scale, MEL_BINS))
    shift128 = jnp.zeros((LANES,), jnp.float32).at[:3 * MEL_BINS].set(
        jnp.repeat(bn_shift, MEL_BINS))

    # TODO(synk): the real `backbone` is an arbitrary external nn.Module (CNN);
    # a GAP + Linear head stands in. BN is folded into it exactly (both are affine).
    head_w = 0.1 * jax.random.normal(k5, (3, CLASSES_NUM), jnp.float32)
    head_b = 0.1 * jax.random.normal(k6, (1, CLASSES_NUM), jnp.float32)
    w_eff = (bn_scale @ head_w)[None, :]                    # (1, C)
    b_eff = (bn_shift @ head_w)[None, :] + head_b           # (1, C)

    return {
        "basis": jnp.asarray(basis, jnp.bfloat16),
        "mel3": jnp.asarray(mel3, jnp.bfloat16),
        "bn_scale128": scale128[None, :],                   # (1, 128)
        "bn_shift128": shift128[None, :],                   # (1, 128)
        "w_eff": w_eff.astype(jnp.float32),
        "b_eff": b_eff.astype(jnp.float32),
    }


if __name__ == "__main__":
    params = make_params()
    x = jax.random.normal(jax.random.PRNGKey(0), (2, 256), jnp.float32)

    feats, logits = jax.jit(audio_classifier_forward)(x, params)
    jax.block_until_ready((feats, logits))

    T_expected = 1 + 256 // HOP_SIZE
    assert feats.shape == (2, 3, T_expected, MEL_BINS)
    assert logits.shape == (2, CLASSES_NUM)
    assert bool(jnp.all(jnp.isfinite(feats))) and bool(jnp.all(jnp.isfinite(logits)))
    print("KERNEL_OK")
</pallas_src>

<mosaic_0001>
module attributes {stable_mosaic.version = 11 : i64} {
  func.func @_feature_head_kernel(%arg0: i32, %arg1: i32, %arg2: memref<1x32x128xbf16, #tpu.memory_space<vmem>>, %arg3: memref<128x128xbf16, #tpu.memory_space<vmem>>, %arg4: memref<128x128xbf16, #tpu.memory_space<vmem>>, %arg5: memref<1x128xf32, #tpu.memory_space<vmem>>, %arg6: memref<1x128xf32, #tpu.memory_space<vmem>>, %arg7: memref<1x10xf32, #tpu.memory_space<vmem>>, %arg8: memref<1x10xf32, #tpu.memory_space<vmem>>, %arg9: memref<1x32x128xf32, #tpu.memory_space<vmem>>, %arg10: memref<1x1x10xf32, #tpu.memory_space<vmem>>, %arg11: memref<1x1xf32, #tpu.memory_space<vmem>>) attributes {dimension_semantics = [#tpu.dimension_semantics<parallel>, #tpu.dimension_semantics<arbitrary>], iteration_bounds = array<i64: 2, 1>, scalar_prefetch = 0 : i64, scratch_operands = 1 : i64, tpu.core_type = #tpu.core_type<tc>, window_params = [{transform_indices = @transform_0, window_bounds = array<i64: 1, 32, 128>}, {pipeline_mode = #tpu.pipeline_mode<synchronous>, transform_indices = @transform_1, window_bounds = array<i64: 128, 128>}, {pipeline_mode = #tpu.pipeline_mode<synchronous>, transform_indices = @transform_2, window_bounds = array<i64: 128, 128>}, {pipeline_mode = #tpu.pipeline_mode<synchronous>, transform_indices = @transform_3, window_bounds = array<i64: 1, 128>}, {pipeline_mode = #tpu.pipeline_mode<synchronous>, transform_indices = @transform_4, window_bounds = array<i64: 1, 128>}, {pipeline_mode = #tpu.pipeline_mode<synchronous>, transform_indices = @transform_5, window_bounds = array<i64: 1, 10>}, {pipeline_mode = #tpu.pipeline_mode<synchronous>, transform_indices = @transform_6, window_bounds = array<i64: 1, 10>}, {transform_indices = @transform_7, window_bounds = array<i64: 1, 32, 128>}, {transform_indices = @transform_8, window_bounds = array<i64: 1, 1, 10>}]} {
    %c0_i32 = arith.constant 0 : i32
    %0 = arith.cmpi eq, %arg1, %c0_i32 : i32
    %1 = arith.extui %0 : i1 to i32
    %c0_i32_0 = arith.constant 0 : i32
    %2 = arith.cmpi ne, %1, %c0_i32_0 : i32
    scf.if %2 {
      %cst_25 = arith.constant 0.000000e+00 : f32
      %48 = vector.broadcast %cst_25 : f32 to vector<1x1xf32>
      %c0_26 = arith.constant 0 : index
      %c0_27 = arith.constant 0 : index
      %49 = vector.load %arg11[%c0_26, %c0_27] : memref<1x1xf32, #tpu.memory_space<vmem>>, vector<1x1xf32>
      tpu.vector_store %arg11[%c0_26, %c0_27], %48 {strides = array<i32>} : memref<1x1xf32, #tpu.memory_space<vmem>>, vector<1x1xf32>,
    } else {
    }
    %c0 = arith.constant 0 : index
    %c0_1 = arith.constant 0 : index
    %c0_2 = arith.constant 0 : index
    %3 = vector.load %arg2[%c0, %c0_1, %c0_2] : memref<1x32x128xbf16, #tpu.memory_space<vmem>>, vector<1x32x128xbf16>
    %4 = vector.shape_cast %3 : vector<1x32x128xbf16> to vector<32x128xbf16>
    %c0_3 = arith.constant 0 : index
    %c0_4 = arith.constant 0 : index
    %5 = vector.load %arg3[%c0_3, %c0_4] : memref<128x128xbf16, #tpu.memory_space<vmem>>, vector<128x128xbf16>
    %cst = arith.constant dense<0.000000e+00> : vector<32x128xf32>
    %6 = tpu.matmul %4, %5, %cst {dimension_numbers = #tpu.dot_dimension_numbers<[1], [0], [0], [1], [0, 0, 1, 1], [], []>} : vector<32x128xbf16>, vector<128x128xbf16>, vector<32x128xf32> -> vector<32x128xf32>
    %7 = arith.mulf %6, %6 : vector<32x128xf32>
    %8 = arith.truncf %7 : vector<32x128xf32> to vector<32x128xbf16>
    %c0_5 = arith.constant 0 : index
    %c0_6 = arith.constant 0 : index
    %9 = vector.load %arg4[%c0_5, %c0_6] : memref<128x128xbf16, #tpu.memory_space<vmem>>, vector<128x128xbf16>
    %cst_7 = arith.constant dense<0.000000e+00> : vector<32x128xf32>
    %10 = tpu.matmul %8, %9, %cst_7 {dimension_numbers = #tpu.dot_dimension_numbers<[1], [0], [0], [1], [0, 0, 1, 1], [], []>} : vector<32x128xbf16>, vector<128x128xbf16>, vector<32x128xf32> -> vector<32x128xf32>
    %cst_8 = arith.constant 1.000000e-10 : f32
    %11 = vector.broadcast %cst_8 : f32 to vector<32x128xf32>
    %12 = arith.maximumf %10, %11 : vector<32x128xf32>
    %13 = math.log %12 : vector<32x128xf32>
    %cst_9 = arith.constant 4.34294462 : f32
    %14 = vector.broadcast %cst_9 : f32 to vector<32x128xf32>
    %15 = arith.mulf %14, %13 : vector<32x128xf32>
    %c0_10 = arith.constant 0 : index
    %c0_11 = arith.constant 0 : index
    %16 = vector.load %arg5[%c0_10, %c0_11] : memref<1x128xf32, #tpu.memory_space<vmem>>, vector<1x128xf32>
    %17 = vector.broadcast %16 : vector<1x128xf32> to vector<32x128xf32>
    %18 = arith.mulf %15, %17 : vector<32x128xf32>
    %c0_12 = arith.constant 0 : index
    %c0_13 = arith.constant 0 : index
    %19 = vector.load %arg6[%c0_12, %c0_13] : memref<1x128xf32, #tpu.memory_space<vmem>>, vector<1x128xf32>
    %20 = vector.broadcast %19 : vector<1x128xf32> to vector<32x128xf32>
    %21 = arith.addf %18, %20 : vector<32x128xf32>
    %c0_14 = arith.constant 0 : index
    %c0_15 = arith.constant 0 : index
    %c0_16 = arith.constant 0 : index
    %22 = vector.load %arg9[%c0_14, %c0_15, %c0_16] : memref<1x32x128xf32, #tpu.memory_space<vmem>>, vector<1x32x128xf32>
    %23 = vector.shape_cast %22 : vector<1x32x128xf32> to vector<32x128xf32>
    %24 = vector.shape_cast %21 : vector<32x128xf32> to vector<1x32x128xf32>
    tpu.vector_store %arg9[%c0_14, %c0_15, %c0_16], %24 {strides = array<i32>} : memref<1x32x128xf32, #tpu.memory_space<vmem>>, vector<1x32x128xf32>,
    %25 = tpu.iota {dimensions = array<i32: 0>} : vector<32x128xi32>
    %c32_i32 = arith.constant 32 : i32
    %26 = arith.muli %arg1, %c32_i32 : i32
    %27 = vector.broadcast %26 : i32 to vector<32x128xi32>
    %28 = arith.addi %25, %27 : vector<32x128xi32>
    %29 = tpu.iota {dimensions = array<i32: 1>} : vector<32x128xi32>
    %c17_i32 = arith.constant 17 : i32
    %30 = vector.broadcast %c17_i32 : i32 to vector<32x128xi32>
    %31 = arith.cmpi slt, %28, %30 : vector<32x128xi32>
    %c16_i32 = arith.constant 16 : i32
    %32 = vector.broadcast %c16_i32 : i32 to vector<32x128xi32>
    %33 = arith.cmpi slt, %29, %32 : vector<32x128xi32>
    %34 = arith.andi %31, %33 : vector<32x128xi1>
    %c0_17 = arith.constant 0 : index
    %c0_18 = arith.constant 0 : index
    %35 = vector.load %arg11[%c0_17, %c0_18] : memref<1x1xf32, #tpu.memory_space<vmem>>, vector<1x1xf32>
    %cst_19 = arith.constant 0.000000e+00 : f32
    %36 = vector.broadcast %cst_19 : f32 to vector<32x128xf32>
    %37 = arith.select %34, %15, %36 : vector<32x128xi1>, vector<32x128xf32>
    %38 = vector.shape_cast %37 : vector<32x128xf32> to vector<1x32x128xf32>
    %cst_20 = arith.constant dense<0.000000e+00> : vector<1xf32>
    %39 = vector.multi_reduction <add>, %38, %cst_20 [1, 2] : vector<1x32x128xf32> to vector<1xf32>
    %40 = vector.shape_cast %39 : vector<1xf32> to vector<1x1x1xf32>
    %41 = vector.extract %40[0, 0, 0] : f32 from vector<1x1x1xf32>
    %42 = vector.broadcast %41 : f32 to vector<1x1xf32>
    %43 = arith.addf %35, %42 : vector<1x1xf32>
    %c0_21 = arith.constant 0 : index
    %c0_22 = arith.constant 0 : index
    %44 = vector.load %arg11[%c0_21, %c0_22] : memref<1x1xf32, #tpu.memory_space<vmem>>, vector<1x1xf32>
    tpu.vector_store %arg11[%c0_21, %c0_22], %43 {strides = array<i32>} : memref<1x1xf32, #tpu.memory_space<vmem>>, vector<1x1xf32>,
    %c0_i32_23 = arith.constant 0 : i32
    %45 = arith.cmpi eq, %arg1, %c0_i32_23 : i32
    %46 = arith.extui %45 : i1 to i32
    %c0_i32_24 = arith.constant 0 : i32
    %47 = arith.cmpi ne, %46, %c0_i32_24 : i32
    scf.if %47 {
      %c0_25 = arith.constant 0 : index
      %c0_26 = arith.constant 0 : index
      %48 = vector.load %arg11[%c0_25, %c0_26] : memref<1x1xf32, #tpu.memory_space<vmem>>, vector<1x1xf32>
      %cst_27 = arith.constant 0.0036764706 : f32
      %49 = vector.broadcast %cst_27 : f32 to vector<1x1xf32>
      %50 = arith.mulf %48, %49 : vector<1x1xf32>
      %c0_28 = arith.constant 0 : index
      %c0_29 = arith.constant 0 : index
      %51 = vector.load %arg7[%c0_28, %c0_29] : memref<1x10xf32, #tpu.memory_space<vmem>>, vector<1x10xf32>
      %52 = vector.broadcast %50 : vector<1x1xf32> to vector<1x10xf32>
      %53 = arith.mulf %52, %51 : vector<1x10xf32>
      %c0_30 = arith.constant 0 : index
      %c0_31 = arith.constant 0 : index
      %54 = vector.load %arg8[%c0_30, %c0_31] : memref<1x10xf32, #tpu.memory_space<vmem>>, vector<1x10xf32>
      %55 = arith.addf %53, %54 : vector<1x10xf32>
      %c0_32 = arith.constant 0 : index
      %c0_33 = arith.constant 0 : index
      %c0_34 = arith.constant 0 : index
      %56 = vector.load %arg10[%c0_32, %c0_33, %c0_34] : memref<1x1x10xf32, #tpu.memory_space<vmem>>, vector<1x1x10xf32>
      %57 = vector.shape_cast %56 : vector<1x1x10xf32> to vector<1x10xf32>
      %58 = vector.shape_cast %55 : vector<1x10xf32> to vector<1x1x10xf32>
      tpu.vector_store %arg10[%c0_32, %c0_33, %c0_34], %58 {strides = array<i32>} : memref<1x1x10xf32, #tpu.memory_space<vmem>>, vector<1x1x10xf32>,
    } else {
    }
    return
  }
  func.func @transform_0(%arg0: i32, %arg1: i32) -> (i32, i32, i32) {
    %c0_i32 = arith.constant 0 : i32
    %c0_i32_0 = arith.constant 0 : i32
    return %arg0, %arg1, %c0_i32 : i32, i32, i32
  }
  func.func @transform_1(%arg0: i32, %arg1: i32) -> (i32, i32) {
    %c0_i32 = arith.constant 0 : i32
    %c0_i32_0 = arith.constant 0 : i32
    %c0_i32_1 = arith.constant 0 : i32
    return %c0_i32, %c0_i32_0 : i32, i32
  }
  func.func @transform_2(%arg0: i32, %arg1: i32) -> (i32, i32) {
    %c0_i32 = arith.constant 0 : i32
    %c0_i32_0 = arith.constant 0 : i32
    %c0_i32_1 = arith.constant 0 : i32
    return %c0_i32, %c0_i32_0 : i32, i32
  }
  func.func @transform_3(%arg0: i32, %arg1: i32) -> (i32, i32) {
    %c0_i32 = arith.constant 0 : i32
    %c0_i32_0 = arith.constant 0 : i32
    %c0_i32_1 = arith.constant 0 : i32
    return %c0_i32, %c0_i32_0 : i32, i32
  }
  func.func @transform_4(%arg0: i32, %arg1: i32) -> (i32, i32) {
    %c0_i32 = arith.constant 0 : i32
    %c0_i32_0 = arith.constant 0 : i32
    %c0_i32_1 = arith.constant 0 : i32
    return %c0_i32, %c0_i32_0 : i32, i32
  }
  func.func @transform_5(%arg0: i32, %arg1: i32) -> (i32, i32) {
    %c0_i32 = arith.constant 0 : i32
    %c0_i32_0 = arith.constant 0 : i32
    %c0_i32_1 = arith.constant 0 : i32
    return %c0_i32, %c0_i32_0 : i32, i32
  }
  func.func @transform_6(%arg0: i32, %arg1: i32) -> (i32, i32) {
    %c0_i32 = arith.constant 0 : i32
    %c0_i32_0 = arith.constant 0 : i32
    %c0_i32_1 = arith.constant 0 : i32
    return %c0_i32, %c0_i32_0 : i32, i32
  }
  func.func @transform_7(%arg0: i32, %arg1: i32) -> (i32, i32, i32) {
    %c0_i32 = arith.constant 0 : i32
    %c0_i32_0 = arith.constant 0 : i32
    return %arg0, %arg1, %c0_i32 : i32, i32, i32
  }
  func.func @transform_8(%arg0: i32, %arg1: i32) -> (i32, i32, i32) {
    %c0_i32 = arith.constant 0 : i32
    %c0_i32_0 = arith.constant 0 : i32
    %c0_i32_1 = arith.constant 0 : i32
    return %arg0, %c0_i32, %c0_i32_0 : i32, i32, i32
  }
}

</mosaic_0001>

<bundles_post_ra>
// kernel: audio_classifier_forward.1
= control target key start
LH: loop header
LB: loop body
LE: loop exit
PB: predicated region body
PF: predicated region fallthrough
CT: control target
= control target key end

     0   :  { %14 = vsyncpa [#allocation4], 0  ;;  %s1344_s0 = inlined_call_operand.vmem [shape: bf16[2,32,128], index: 0, kind: input, shape index: {}]   ;;  %s1345_s1 = inlined_call_operand.vmem [shape: bf16[128,128], index: 1, kind: input, shape index: {}]   ;;  %s1346_s2 = inlined_call_operand.vmem [shape: bf16[128,128], index: 2, kind: input, shape index: {}]   ;;  %s1347_s3 = inlined_call_operand.vmem [shape: f32[1,128], index: 3, kind: input, shape index: {}]   ;;  %s1348_s4 = inlined_call_operand.vmem [shape: f32[1,128], index: 4, kind: input, shape index: {}]   ;;  %s1349_s5 = inlined_call_operand.vmem [shape: f32[1,10], index: 5, kind: input, shape index: {}]   ;;  %s1350_s6 = inlined_call_operand.vmem [shape: f32[1,10], index: 6, kind: input, shape index: {}]   ;;  %s1351_s7 = inlined_call_operand.vmem [shape: f32[2,32,128], index: 7, kind: output, shape index: {0}]   ;;  %s1352_s8 = inlined_call_operand.hbm [shape: f32[2,1,10], index: 8, kind: output, shape index: {1}]  }
   0x1   :  { %16 = vsyncpa [#allocation4 + $0x1], 0  ;;  %s1155_s27 = smov 0   ;;  %s1157_s28 = smov 0  }
   0x2   :  { %s1159_s29 = smov 0   ;;  %s1161_s30 = smov 0  }
   0x3   :  { %s1163_s9 = smov 0   ;;  %s1165_s10 = smov 0  }
   0x4 LB: > { %s847_s11 = sadd.s32 4294967295, %s1105_s10   ;;  %s848_s12 = sadd.s32 4294967294, %s1105_s10   ;;  %s1105_s10 = sphi %s1165_s10, %s22_s10   ;;  %s1101_s9 = sphi %s1163_s9, %s1359_s9   ;;  %s1097_s30 = sphi %s1161_s30, %s1358_s30   ;;  %s1093_s29 = sphi %s1159_s29, %s1357_s29   ;;  %s1089_s28 = sphi %s1157_s28, %s1356_s28   ;;  %s1085_s27 = sphi %s1155_s27, %s1355_s27  }
   0x5   : > { %s34_s13 = sadd.s32 1, %s1101_s9  ;;  %s223_s14 = sadd.s32 1, %s1093_s29 }
   0x6   : > { %p36_p0 = scmp.ge.s32.totalorder %s34_s13, 2  ;;  %p233_p1 = scmp.ne.s32.totalorder %s1093_s29, %s1089_s28 }
   0x7   : > { %p234_p2 = scmp.eq.s32.totalorder %s847_s11, 1  ;;  %p239_p3 = scmp.ne.s32.totalorder %s1089_s28, %s1085_s27 }
   0x8   : > { %s1361_s13 = smov (%p36_p0, %s34_s13), 0  ;;  %p240_p5 = scmp.eq.s32.totalorder %s848_s12, 1 }
   0x9   : > { %p1195_p4 = por %p234_p2, %p233_p1  ;;  %s220_s16 = ssub.s32 %s1101_s9, %s1361_s13 }
   0xa   : > { %p851_p6 = scmp.ge.s32.totalorder %s1105_s10, 1  ;;  %p221_p7 = scmp.eq.s32.totalorder %s220_s16, 0 }
   0xb   : > { %p1202_p8 = por %p240_p5, %p239_p3  ;;  %p289_p9 = scmp.lt.s32.totalorder %s1105_s10, 3 }
   0xc   : > { %s1208_s18 = scalar_select %p221_p7, %s1093_s29, %s223_s14  }
   0xd   : > { %p290_p10 = pnand %p851_p6, %p289_p9 }
   0xe   : > { %v1001_v0 = vld [vmem:[%s1345_s1] sm:$0xff] (!%p290_p10)   ;;  %p336_p11 = scmp.lt.s32.totalorder (!%p290_p10), %s1097_s30, 1  ;;  %v1002_v1 = vld [vmem:[%s1345_s1 + $0x8] sm:$0xff] (!%p290_p10)   ;;  %v1003_v2 = vld [vmem:[%s1345_s1 + $0x10] sm:$0xff] (!%p290_p10)   ;;  %v652_v36 = vlaneseq (!%p290_p10)  ;;  %vm360_vm3 = vcmask (!%p290_p10), 0   ;;  %s333_s21 = sand.u32 (!%p290_p10), 1, %s1089_s28  }
   0xf   : > { %293 = sbr.rel (%p290_p10) target bundleno = 869 (0x365), region = 48  ;;  %901 = vmatprep.subr.bf16.mxu0 (!%p290_p10), %v1001_v0  ;;  %v1004_v3 = vld [vmem:[%s1345_s1 + $0x18] sm:$0xff] (!%p290_p10)   ;;  %v1011_v5 = vld [vmem:[%s1346_s2] sm:$0xff] (!%p290_p10)   ;;  %v1012_v6 = vld [vmem:[%s1346_s2 + $0x8] sm:$0xff] (!%p290_p10)   ;;  %s334_s11 = scalar_lea.vmem (!%p290_p10), [#allocation3], %s333_s21  ;;  %vm713_vm4 = vcmask (!%p290_p10), 73728  }
  0x10   : > { %902 = vmatpush3.bf16.msra.mxu0 (!%p290_p10), %v1001_v0  ;;  %v1005_v7 = vld [vmem:[%s1345_s1 + $0x20] sm:$0xff] (!%p290_p10)   ;;  %921 = vmatprep.subr.bf16.mxu1 (!%p290_p10), %v1011_v5  ;;  %v1013_v8 = vld [vmem:[%s1346_s2 + $0x10] sm:$0xff] (!%p290_p10)   ;;  %v1006_v9 = vld [vmem:[%s1345_s1 + $0x28] sm:$0xff] (!%p290_p10)   ;;  %v1270_v37 = vshrl.u32 (!%p290_p10), %v652_v36, 7  ;;  %v664_v39 = vand.u32 (!%p290_p10), 127, %v652_v36  ;;  %s741_s12 = sshll.u32 (!%p290_p10), %s334_s11, 4  ;;  %s1299_s12 = int_to_ptr.vmem [resolvable:$true] %s741_s12 }
  0x11   : > { %903 = vmatprep.subr.bf16.mxu0 (!%p290_p10), %v1002_v1  ;;  %922 = vmatpush3.bf16.msra.mxu1 (!%p290_p10), %v1011_v5  ;;  %v1014_v10 = vld [vmem:[%s1346_s2 + $0x18] sm:$0xff] (!%p290_p10)   ;;  %v1007_v11 = vld [vmem:[%s1345_s1 + $0x30] sm:$0xff] (!%p290_p10)   ;;  %v1015_v12 = vld [vmem:[%s1346_s2 + $0x20] sm:$0xff] (!%p290_p10)   ;;  %s1027_s22 = scalar_lea.vmem (!%p290_p10), %s1299_s12, 16 }
  0x12   : > { %923 = vmatprep.subr.bf16.mxu1 (!%p290_p10), %v1012_v6  ;;  %v1008_v13 = vld [vmem:[%s1345_s1 + $0x38] sm:$0xff] (!%p290_p10)   ;;  %v1016_v14 = vld [vmem:[%s1346_s2 + $0x28] sm:$0xff] (!%p290_p10)   ;;  %v1017_v16 = vld [vmem:[%s1346_s2 + $0x30] sm:$0xff] (!%p290_p10)   ;;  %v655_v38 = vadd.s32 (!%p290_p10), 16, %v1270_v37  ;;  %vm669_vm1 = vcmp.lt.s32.totalorder (!%p290_p10), %v664_v39, 16  ;;  %p1028_p12 = scmp.ne.s32.totalorder (!%p290_p10), %s1299_s12, %s1027_s22 }
  0x13   : > { %v1018_v17 = vld [vmem:[%s1346_s2 + $0x38] sm:$0xff] (!%p290_p10)   ;;  %v874_v45 = vld [vmem:[%s1347_s3] ss:$0 sm:$0xff] (!%p290_p10) }
  0x14   : > { %904 = vmatpush3.bf16.msra.mxu0 (!%p290_p10), %v1002_v1  ;;  %vm667_vm0 = vcmp.lt.s32.totalorder (!%p290_p10), %v655_v38, 17  ;;  %v875_v50 = vld [vmem:[%s1348_s4] ss:$0 sm:$0xff] (!%p290_p10)  ;;  %p1029_p13 = pnand (!%p290_p10), %p1028_p12, %p1195_p4 }
  0x15   : > { %905 = vmatprep.subr.bf16.mxu0 (!%p290_p10), %v1003_v2  ;;  %924 = vmatpush3.bf16.msra.mxu1 (!%p290_p10), %v1012_v6  ;;  %vm672_vm2 = vmand (!%p290_p10), %vm667_vm0, %vm669_vm1 }
  0x16   : > { %s1218_s23 = scalar_select %p336_p11, %s1097_s30, 1  ;;  %925 = vmatprep.subr.bf16.mxu1 %v1013_v8 }
  0x17   : > { %p1030_p0 = pneg %p1029_p13 }
  0x18   : > { %s879_s26 = sshll.u32 %s1218_s23, 4  ;;  %906 = vmatpush3.bf16.msra.mxu0 %v1003_v2 }
  0x19   : > { %s1227_s14 = scalar_lea.vmem %s1344_s0, %s879_s26  ;;  %907 = vmatprep.subr.bf16.mxu0 %v1004_v3  ;;  %926 = vmatpush3.bf16.msra.mxu1 %v1013_v8  ;;  %s876_s26 = sshll.u32 %s1097_s30, 4 }
  0x1a   : > { %v1009_v4 = vld [vmem:[%s1227_s14] sm:$0xff]   ;;  %927 = vmatprep.subr.bf16.mxu1 %v1014_v10  ;;  %v1010_v15 = vld [vmem:[%s1227_s14 + $0x8] sm:$0xff]   ;;  %s880_s14 = sshll.u32 %s1218_s23, 5  ;;  %s1109_s30 = smov [#allocation3]  }
  0x1b   : > { %917 = vmatprep.mubr.bf16.mxu0 %v1009_v4  ;;  %s353_s19 = scalar_lea.vmem %s1351_s7, %s880_s14  ;;  %v1108_v4 = vmov 0   ;;  %s1031_s24 = sshll.u32 %s1109_s30, 4  ;;  %s1032_s24 = int_to_ptr.vmem [resolvable:$false] %s1031_s24 }
  0x1c   : > { %908 = vmatpush3.bf16.msra.mxu0 %v1004_v3  ;;  %v1107_v3 = vmov 0.0   ;;  %1000 = vset.pattern.permute.xlu0 %v1108_v4  ;;  %s1033_s14 = scalar_lea.vmem %s1032_s24, 32  ;;  %p1034_p1 = scmp.lt.s32.totalorder %s1299_s12, %s1032_s24 }
  0x1d   : > { %909 = vmatprep.subr.bf16.mxu0 %v1005_v7  ;;  %928 = vmatpush3.bf16.msra.mxu1 %v1014_v10  ;;  %361 = vst.msk [vmem:[#allocation2] sm:$0x1] %vm360_vm3, %v1107_v3  ;;  %p1035_p2 = scmp.lt.s32.totalorder %s1033_s14, %s1027_s22 }
  0x1e   : > { %929 = vmatprep.subr.bf16.mxu1 %v1015_v12 }
  0x1f   : > { %p1036_p3 = por %p1035_p2, %p1034_p1 }
  0x20   : > { %910 = vmatpush3.bf16.msra.mxu0 %v1005_v7 }
  0x21   : > { %911 = vmatprep.subr.bf16.mxu0 %v1006_v9  ;;  %930 = vmatpush3.bf16.msra.mxu1 %v1015_v12  ;;  %p1037_p5 = pnand %p1036_p3, %p1030_p0 }
  0x22   : > { %931 = vmatprep.subr.bf16.mxu1 %v1016_v14 }
  0x24   : > { %912 = vmatpush3.bf16.msra.mxu0 %v1006_v9  ;;  %v674_v12 = vld [vmem:[#allocation2] sm:$0x1] }
  0x25   : > { %913 = vmatprep.subr.bf16.mxu0 %v1007_v11  ;;  %932 = vmatpush3.bf16.msra.mxu1 %v1016_v14 }
  0x26   : > { %933 = vmatprep.subr.bf16.mxu1 %v1017_v16 }
  0x28   : > { %914 = vmatpush3.bf16.msra.mxu0 %v1007_v11 }
  0x29   : > { %915 = vmatprep.subr.bf16.mxu0 %v1008_v13  ;;  %934 = vmatpush3.bf16.msra.mxu1 %v1017_v16 }
  0x2a   : > { %935 = vmatprep.subr.bf16.mxu1 %v1018_v17 }
  0x2c   : > { %916 = vmatpush3.bf16.msra.mxu0 %v1008_v13 }
  0x2d   : > { %936 = vmatpush3.bf16.msra.mxu1 %v1018_v17  ;;  %v708_v17 = vsub.s32 0, %v1270_v37 }
  0x2f   : > { %918 = vmatmul.mubr.bf16.vlgmr.msra.gmra.mrb[0].mxu0 %v1010_v15 }
 0x102   : > { %v919_v18 = vpop.f32.mrb[0].mxu0 }
 0x103   : > { %v476_v19 = vpop.f32.mrb[1].mxu0  ;;  %v493_v21 = vmul.f32 %v919_v18, %v919_v18  ;;  %v700_v18 = vld [vmem:[%s1349_s5] sm:$0x1] }
 0x104   : > { %v920_v20 = vpop.f32.mrb[2].mxu0  ;;  %v491_v24 = vmul.f32 %v476_v19, %v476_v19 }
 0x105   : > { %v494_v22 = vmul.f32 %v920_v20, %v920_v20  ;;  %v479_v23 = vpop.f32.mrb[3].mxu0 }
 0x106   : > { %v492_v25 = vmul.f32 %v479_v23, %v479_v23 }
 0x107   : > { %v496_v26 = vpack.c.bf16 %v494_v22, %v493_v21  ;;  %v711_v21 = vld [vmem:[%s1350_s6] sm:$0x1] }
 0x108   : > { %v495_v27 = vpack.c.bf16 %v492_v25, %v491_v24 }
 0x10a   : > { %937 = vmatprep.mubr.bf16.mxu1 %v495_v27 }
 0x10b   : > { %938 = vmatmul.mubr.bf16.vlgmr.msra.gmra.mrb[0].mxu1 %v496_v26 }
 0x1de   : > { %v939_v28 = vpop.f32.mrb[0].mxu1 }
 0x1df   : > { %v612_v29 = vmax.f32 %v939_v28, 1e-10  ;;  %v595_v30 = vpop.f32.mrb[1].mxu1 }
 0x1e0   : > { %v610_v31 = vmax.f32 %v595_v30, 1e-10  ;;  %v940_v32 = vpop.f32.mrb[2].mxu1 }
 0x1e1   : > { %1019 = vlog2.f32 %v612_v29  ;;  %v613_v33 = vmax.f32 %v940_v32, 1e-10  ;;  %v598_v34 = vpop.f32.mrb[3].mxu1 }
 0x1e2   : > { %1021 = vlog2.f32 %v610_v31  ;;  %v611_v35 = vmax.f32 %v598_v34, 1e-10 }
 0x1e3   : > { %1023 = vlog2.f32 %v613_v33 }
 0x1e4   : > { %1025 = vlog2.f32 %v611_v35 }
 0x1eb   : > { %v1020_v40 = vpop.eup %1019 }
 0x1ec   : > { %v1022_v41 = vpop.eup %1021  ;;  %v619_v42 = vmul.f32 0.6931472, %v1020_v40 }
 0x1ed   : > { %v1024_v43 = vpop.eup %1023  ;;  %v615_v44 = vmul.f32 0.6931472, %v1022_v41 }
 0x1ee   : > { %v1026_v46 = vpop.eup %1025  ;;  %v621_v47 = vmul.f32 0.6931472, %v1024_v43  ;;  %v624_v48 = vmul.f32 4.3429446, %v619_v42 }
 0x1ef   : > { %v622_v49 = vmul.f32 4.3429446, %v615_v44  ;;  %v617_v51 = vmul.f32 0.6931472, %v1026_v46 }
 0x1f0   : > { %v625_v52 = vmul.f32 4.3429446, %v621_v47  ;;  %v635_v53 = vmul.f32 %v874_v45, %v624_v48  ;;  %v677_v1 = vsel %vm672_vm2, %v624_v48, 0.0 }
 0x1f1   : > { %v633_v54 = vmul.f32 %v874_v45, %v622_v49  ;;  %v623_v55 = vmul.f32 4.3429446, %v617_v51  ;;  %v675_v60 = vsel %vm669_vm1, %v622_v49, 0.0 }
 0x1f2   : > { %v636_v56 = vmul.f32 %v874_v45, %v625_v52  ;;  %v646_v57 = vadd.f32 %v875_v50, %v635_v53 }
 0x1f3   : > { %v644_v58 = vadd.f32 %v875_v50, %v633_v54  ;;  %v634_v59 = vmul.f32 %v874_v45, %v623_v55  ;;  %v676_v61 = vsel %vm669_vm1, %v623_v55, 0.0 }
 0x1f4   : > { %v647_v62 = vadd.f32 %v875_v50, %v636_v56  ;;  %650 = vst [vmem:[%s353_s19 + $0x10] sm:$0xff] %v646_v57  ;;  %v679_v63 = vadd.f32 %v676_v61, %v675_v60 }
 0x1f5   : > { %648 = vst [vmem:[%s353_s19] sm:$0xff] %v644_v58  ;;  %v645_v0 = vadd.f32 %v875_v50, %v634_v59 }
 0x1f6   : > { %651 = vst [vmem:[%s353_s19 + $0x18] sm:$0xff] %v647_v62  ;;  %v680_v2 = vadd.f32 %v679_v63, %v677_v1 }
 0x1f7   : > { %649 = vst [vmem:[%s353_s19 + $0x8] sm:$0xff] %v645_v0  ;;  %s1297_s19 = scalar_lea.hbm %s1352_s8, %s876_s26 }
 0x1f8   : > { %682 = vadd.xlane.f32.xlu0 %v680_v2 }
 0x285   : > { %v683_v5 = vpop.xlane.xlu0 %682 }
 0x286   : > { %v684_v6 = vrot.slane %v683_v5, 4 }
 0x288   : > { %v685_v7 = vadd.f32 %v684_v6, %v683_v5 }
 0x28a   : > { %v686_v8 = vrot.slane %v685_v7, 2 }
 0x28c   : > { %v687_v9 = vadd.f32 %v686_v8, %v685_v7 }
 0x28e   : > { %v688_v10 = vrot.slane %v687_v9, 1 }
 0x290   : > { %v689_v11 = vadd.f32 %v688_v10, %v687_v9 }
 0x292   : > { %941 = vpush %v689_v11 }
 0x2c3   : > { %s942_s20 = spop %941 }
 0x2c4   : > { %v691_v13 = vstv %s942_s20  ;;  %s725_s20 = scalar_lea.sflag [#allocation4], %s333_s21 }
 0x2c5   : > { %v692_v14 = vadd.f32 %v691_v13, %v674_v12 }
 0x2c7   : > { %694 = vst.msk [vmem:[#allocation2] sm:$0x1] %vm360_vm3, %v692_v14 }
 0x2ce   : > { %v698_v15 = vld [vmem:[#allocation2] sm:$0x1] }
 0x2cf   : > { %v699_v16 = vmul.f32 0.0036764706, %v698_v15 }
 0x2d1   : > { %703 = vperm.xlu0 %1000, %v699_v16  }
 0x350   : > { %v704_v19 = vpop.permute.xlu0 %703 }
 0x351   : > { %v709_v20 = vrot.slane %v704_v19, %v708_v17 }
 0x353   : > { %v710_v22 = vmul.f32 %v709_v20, %v700_v18 }
 0x355   : > { %v712_v23 = vadd.f32 %v711_v21, %v710_v22 }
 0x357   : > { %714 = vst.msk [vmem:[%s334_s11] sm:$0x1] %vm713_vm4, %v712_v23 }
 0x358   : > { %1040 = shalt.err (!%p1037_p5)
}
 0x359   : > { %s1041_s21 = scalar_lea.hbm %s1297_s19, 16  ;;  %s1045_s11 = scalar_lea.hbm %s1352_s8, 32 }
 0x35a   : > { %p1042_p6 = scmp.ne.s32.totalorder %s1297_s19, %s1041_s21  ;;  %p1046_p10 = scmp.lt.u32.totalorder %s1297_s19, %s1352_s8 }
 0x35b   : > { %p1047_p11 = scmp.lt.u32.totalorder %s1045_s11, %s1041_s21  ;;  %p1049_p13 = scmp.lt.u32.totalorder %s1041_s21, %s1297_s19 }
 0x35c   : > { %p1043_p7 = pnand %p1042_p6, %p1195_p4 }
 0x35d   : > { %p1048_p12 = por %p1047_p11, %p1046_p10 }
 0x35e   : > { %p1044_p9 = pneg %p1043_p7 }
 0x35f   : > { %p1050_p0 = por %p1049_p13, %p1048_p12 }
 0x361   : > { %p1051_p1 = pnand %p1050_p0, %p1044_p9 }
 0x363   : > { %1054 = shalt.err (!%p1051_p1)
}
 0x364   : > { %943 = dma.vmem_to_hbm [thread:$0]  (%p1195_p4), %s1299_s12, 16, %s1297_s19, %s725_s20  }
 0x365 PF: > { %p949_p2 = scmp.ge.s32.totalorder %s1105_s10, 2  ;;  %s765_s22 = sand.u32 1, %s1085_s27  }
 0x366   : > { %s766_s30 = scalar_lea.sflag [#allocation4], %s765_s22 }
 0x367   : > { %p946_p3 = pnand %p949_p2, %p1202_p8 }
 0x369   : > { %1080 = dma.done.wait (!%p946_p3), %s766_s30, 16  }
 0x36a   : > { %1082 = vsyncadd (!%p946_p3), %s766_s30, 4294967280  ;;  %s22_s10 = sadd.s32 1, %s1105_s10   ;;  %s1355_s27 = smov %s1089_s28 }
 0x36b   : > { %p19_p5 = scmp.ge.s32.totalorder %s22_s10, 4   ;;  %s1356_s28 = smov %s1093_s29 }
 0x36c   : > { %s1357_s29 = smov %s1208_s18  ;;  %s1358_s30 = smov %s1101_s9 }
 0x36d   : > { %s1359_s9 = smov %s1361_s13  ;;  %21 = sbr.rel (!%p19_p5) target bundleno = 4 (0x4), region = 103 }
 0x374   :  { %770 = vsyncpa [#allocation4], 1 }
 0x375   :  { %772 = vsyncpa [#allocation4 + $0x1], 1 }

</bundles_post_ra>
